<compile_context>
chip_gen: v5e
topology: v5e:2x2
jax: 0.10.0
libtpu: 0.0.40
codegen_flags: <defaults>
</compile_context>

<pallas_src>
import functools

import jax
import jax.numpy as jnp
from jax.experimental import pallas as pl
from jax.experimental.pallas import tpu as pltpu


def _round_up(x: int, m: int) -> int:
    return (x + m - 1) // m * m


def _mlp_kernel(x_ref, w0_ref, b0_ref, w1_ref, b1_ref, w2_ref, b2_ref, out_ref):
    # x arrives as f32 straight from HBM; cast to bf16 in-kernel (free VPU op).
    x = x_ref[...].astype(jnp.bfloat16)
    # fc_in + ReLU  (bf16 MXU inputs, f32 accumulation)
    h0 = jnp.dot(x, w0_ref[...], preferred_element_type=jnp.float32)
    h0 = jnp.maximum(h0 + b0_ref[...], 0.0).astype(jnp.bfloat16)
    # fc1 + ReLU
    h1 = jnp.dot(h0, w1_ref[...], preferred_element_type=jnp.float32)
    h1 = jnp.maximum(h1 + b1_ref[...], 0.0).astype(jnp.bfloat16)
    # fc_out (no activation); lane-dense bf16 store (padded to 128 lanes)
    o = jnp.dot(h1, w2_ref[...], preferred_element_type=jnp.float32)
    out_ref[...] = (o + b2_ref[...]).astype(out_ref.dtype)


def prepare_params(params):
    """Pad + cast weights once (outside the per-call jitted forward).

    Input params: (w0, b0, w1, b1, w2, b2) with weights stored transposed as
    (in_features, out_features) and biases as (1, out_features).
    Output: bf16 weights with output dims padded to multiples of 128 and
    f32 biases padded likewise.  The zero padding is mathematically inert
    (zero weights/biases + ReLU), so results are unchanged.
    """
    w0, b0, w1, b1, w2, b2 = params
    d_in, d1 = w0.shape
    d2 = w1.shape[1]
    n_actions = w2.shape[1]
    d1_p = _round_up(d1, 128)
    d2_p = _round_up(d2, 128)
    a_p = _round_up(n_actions, 128)

    def pad_w(w, rp, cp):
        out = jnp.zeros((rp, cp), jnp.bfloat16)
        return out.at[: w.shape[0], : w.shape[1]].set(w.astype(jnp.bfloat16))

    def pad_b(b, cp):
        b2d = jnp.asarray(b, jnp.float32).reshape(1, -1)
        out = jnp.zeros((1, cp), jnp.float32)
        return out.at[:, : b2d.shape[1]].set(b2d)

    return (
        pad_w(w0, d_in, d1_p), pad_b(b0, d1_p),   # fc_in : d_in   -> d1_p
        pad_w(w1, d1_p, d2_p), pad_b(b1, d2_p),   # fc1   : d1_p   -> d2_p
        pad_w(w2, d2_p, a_p), pad_b(b2, a_p),     # fc_out: d2_p   -> a_p
    )


@functools.partial(jax.jit, static_argnames=("n_actions", "batch_tile"))
def fcdqn_sokoban_forward(x_nchw, prepared, n_actions, *, batch_tile: int = 2048):
    """x_nchw: (B, 4, H, W) float32; prepared: output of prepare_params().

    Returns (B, n_actions) float32 Q-values.
    """
    w0p, b0p, w1p, b1p, w2p, b2p = prepared
    B = x_nchw.shape[0]
    d_in = w0p.shape[0]
    d1_p = w0p.shape[1]
    d2_p = w1p.shape[1]
    a_p = w2p.shape[1]

    # --- plain-JAX glue: flatten (== torch nn.Flatten) -----------------------
    x_flat = x_nchw.reshape(B, -1).astype(jnp.float32)
    assert x_flat.shape[1] == d_in, (x_flat.shape, d_in)

    # --- adaptive batch tiling ------------------------------------------------
    # At least 2 grid steps for mid/large batches so the "parallel" axis can
    # shard across both TensorCores on v7x; tile sized to minimize padding.
    n_tiles = max(pl.cdiv(B, batch_tile), 1)
    if B >= 16 and n_tiles < 2:
        n_tiles = 2
    tb = _round_up(pl.cdiv(B, n_tiles), 8)       # sublane-aligned tile
    b_p = n_tiles * tb
    if b_p > B:
        # Only batch-remainder padding; feature dim is passed at full extent.
        x_flat = jnp.pad(x_flat, ((0, b_p - B), (0, 0)))

    grid = (n_tiles,)

    # --- advisory cost + right-sized VMEM limit -------------------------------
    flops = 2 * b_p * (d_in * d1_p + d1_p * d2_p + d2_p * a_p)
    weight_bytes = (w0p.size + w1p.size + w2p.size) * 2
    bias_bytes = (b0p.size + b1p.size + b2p.size) * 4
    bytes_accessed = b_p * d_in * 4 + weight_bytes + bias_bytes + b_p * a_p * 2

    # Footprint: resident weights/biases + double-buffered x and out tiles.
    footprint = weight_bytes + bias_bytes + 2 * tb * d_in * 4 + 2 * tb * a_p * 2
    vmem_limit = min(max(int(footprint * 1.5) + (2 << 20), 4 << 20), 48 << 20)

    out_pad = pl.pallas_call(
        _mlp_kernel,
        out_shape=jax.ShapeDtypeStruct((b_p, a_p), jnp.bfloat16),
        grid=grid,
        in_specs=[
            # x: batch-tiled, full feature extent (no 128-padding needed).
            pl.BlockSpec((tb, d_in), lambda i: (i, 0)),
            # Weights/biases: constant index_map -> fetched once, VMEM-resident.
            pl.BlockSpec((d_in, d1_p), lambda i: (0, 0)),
            pl.BlockSpec((1, d1_p), lambda i: (0, 0)),
            pl.BlockSpec((d1_p, d2_p), lambda i: (0, 0)),
            pl.BlockSpec((1, d2_p), lambda i: (0, 0)),
            pl.BlockSpec((d2_p, a_p), lambda i: (0, 0)),
            pl.BlockSpec((1, a_p), lambda i: (0, 0)),
        ],
        out_specs=pl.BlockSpec((tb, a_p), lambda i: (i, 0)),
        compiler_params=pltpu.CompilerParams(
            dimension_semantics=("parallel",),
            vmem_limit_bytes=vmem_limit,
        ),
        cost_estimate=pl.CostEstimate(
            flops=flops, transcendentals=0, bytes_accessed=bytes_accessed
        ),
    )(x_flat, w0p, b0p, w1p, b1p, w2p, b2p)

    # Slice away batch / action padding; cast back to f32 for callers.
    return out_pad[:B, :n_actions].astype(jnp.float32)


def init_params(key, n_observations, n_actions):
    """Deterministic init mimicking torch.nn.Linear defaults (U(-1/sqrt(fan_in), +))."""
    dim_in = 4 * n_observations
    dim1 = n_observations
    dim2 = n_observations // 2

    def linear(k, fan_in, fan_out):
        kw, kb = jax.random.split(k)
        bound = 1.0 / (fan_in ** 0.5)
        # stored transposed: (in, out)
        w = jax.random.uniform(kw, (fan_in, fan_out), jnp.float32, -bound, bound)
        b = jax.random.uniform(kb, (1, fan_out), jnp.float32, -bound, bound)
        return w, b

    k0, k1, k2 = jax.random.split(key, 3)
    w0, b0 = linear(k0, dim_in, dim1)      # fc_in : 4*N -> N
    w1, b1 = linear(k1, dim1, dim2)        # fc1   : N   -> N//2
    w2, b2 = linear(k2, dim2, n_actions)   # fc_out: N//2 -> n_actions
    return (w0, b0, w1, b1, w2, b2)


def reference_forward_f32(x_nchw, params):
    """Pure f32 reference (matches the PyTorch module's math)."""
    w0, b0, w1, b1, w2, b2 = params
    x = x_nchw.reshape(x_nchw.shape[0], -1).astype(jnp.float32)
    h0 = jnp.maximum(x @ w0 + b0, 0.0)
    h1 = jnp.maximum(h0 @ w1 + b1, 0.0)
    return h1 @ w2 + b2


def reference_forward_bf16(x_nchw, params):
    """Reference mirroring the kernel's bf16-input / f32-accumulate numerics."""
    w0, b0, w1, b1, w2, b2 = params
    bf = lambda a: a.astype(jnp.bfloat16)
    x = bf(x_nchw.reshape(x_nchw.shape[0], -1).astype(jnp.float32))
    h0 = jnp.maximum(
        jnp.dot(x, bf(w0), preferred_element_type=jnp.float32) + b0, 0.0
    ).astype(jnp.bfloat16)
    h1 = jnp.maximum(
        jnp.dot(h0, bf(w1), preferred_element_type=jnp.float32) + b1, 0.0
    ).astype(jnp.bfloat16)
    o = jnp.dot(h1, bf(w2), preferred_element_type=jnp.float32) + b2
    # Kernel stores its result as bf16; mirror that rounding.
    return o.astype(jnp.bfloat16).astype(jnp.float32)


if __name__ == "__main__":
    # Sokoban map 8x8 => n_observations = 64 (>= 4x4 as required), 4 actions.
    batch = 2
    map_edge = 8
    n_observations = map_edge * map_edge
    n_actions = 4

    key = jax.random.PRNGKey(0)
    k_params, k_x = jax.random.split(key)
    params = init_params(k_params, n_observations, n_actions)
    prepared = prepare_params(params)          # pad/cast once, outside the hot path

    # layout: NCHW input, 4 channels (Sokoban one-hot-ish planes)
    x = jax.random.normal(k_x, (batch, 4, map_edge, map_edge), dtype=jnp.float32)

    out = fcdqn_sokoban_forward(x, prepared, n_actions)
    out = jax.block_until_ready(out)
    assert out.shape == (batch, n_actions)

    # Tight check against a bf16-mirrored reference (same quantization as kernel).
    ref_bf16 = reference_forward_bf16(x, params)
    assert jnp.allclose(out, ref_bf16, atol=1e-2, rtol=1e-2), (out, ref_bf16)

    # Loose check against the pure-f32 PyTorch-equivalent math.
    ref_f32 = reference_forward_f32(x, params)
    assert jnp.allclose(out, ref_f32, atol=5e-2, rtol=5e-2), (out, ref_f32)

    print("KERNEL_OK")
</pallas_src>

<mosaic_0001>
module attributes {stable_mosaic.version = 11 : i64} {
  func.func @_mlp_kernel(%arg0: i32, %arg1: memref<8x256xf32, #tpu.memory_space<vmem>>, %arg2: memref<256x128xbf16, #tpu.memory_space<vmem>>, %arg3: memref<1x128xf32, #tpu.memory_space<vmem>>, %arg4: memref<128x128xbf16, #tpu.memory_space<vmem>>, %arg5: memref<1x128xf32, #tpu.memory_space<vmem>>, %arg6: memref<128x128xbf16, #tpu.memory_space<vmem>>, %arg7: memref<1x128xf32, #tpu.memory_space<vmem>>, %arg8: memref<8x128xbf16, #tpu.memory_space<vmem>>) attributes {dimension_semantics = [#tpu.dimension_semantics<parallel>], iteration_bounds = array<i64: 1>, scalar_prefetch = 0 : i64, scratch_operands = 0 : i64, tpu.core_type = #tpu.core_type<tc>, window_params = [{transform_indices = @transform_0, window_bounds = array<i64: 8, 256>}, {pipeline_mode = #tpu.pipeline_mode<synchronous>, transform_indices = @transform_1, window_bounds = array<i64: 256, 128>}, {pipeline_mode = #tpu.pipeline_mode<synchronous>, transform_indices = @transform_2, window_bounds = array<i64: 1, 128>}, {pipeline_mode = #tpu.pipeline_mode<synchronous>, transform_indices = @transform_3, window_bounds = array<i64: 128, 128>}, {pipeline_mode = #tpu.pipeline_mode<synchronous>, transform_indices = @transform_4, window_bounds = array<i64: 1, 128>}, {pipeline_mode = #tpu.pipeline_mode<synchronous>, transform_indices = @transform_5, window_bounds = array<i64: 128, 128>}, {pipeline_mode = #tpu.pipeline_mode<synchronous>, transform_indices = @transform_6, window_bounds = array<i64: 1, 128>}, {transform_indices = @transform_7, window_bounds = array<i64: 8, 128>}]} {
    %c0 = arith.constant 0 : index
    %c0_0 = arith.constant 0 : index
    %0 = vector.load %arg1[%c0, %c0_0] : memref<8x256xf32, #tpu.memory_space<vmem>>, vector<8x256xf32>
    %1 = arith.truncf %0 : vector<8x256xf32> to vector<8x256xbf16>
    %c0_1 = arith.constant 0 : index
    %c0_2 = arith.constant 0 : index
    %2 = vector.load %arg2[%c0_1, %c0_2] : memref<256x128xbf16, #tpu.memory_space<vmem>>, vector<256x128xbf16>
    %cst = arith.constant dense<0.000000e+00> : vector<8x128xf32>
    %3 = tpu.matmul %1, %2, %cst {dimension_numbers = #tpu.dot_dimension_numbers<[1], [0], [0], [1], [0, 0, 1, 1], [], []>} : vector<8x256xbf16>, vector<256x128xbf16>, vector<8x128xf32> -> vector<8x128xf32>
    %c0_3 = arith.constant 0 : index
    %c0_4 = arith.constant 0 : index
    %4 = vector.load %arg3[%c0_3, %c0_4] : memref<1x128xf32, #tpu.memory_space<vmem>>, vector<1x128xf32>
    %5 = vector.broadcast %4 : vector<1x128xf32> to vector<8x128xf32>
    %6 = arith.addf %3, %5 : vector<8x128xf32>
    %cst_5 = arith.constant 0.000000e+00 : f32
    %7 = vector.broadcast %cst_5 : f32 to vector<8x128xf32>
    %8 = arith.maximumf %6, %7 : vector<8x128xf32>
    %9 = arith.truncf %8 : vector<8x128xf32> to vector<8x128xbf16>
    %c0_6 = arith.constant 0 : index
    %c0_7 = arith.constant 0 : index
    %10 = vector.load %arg4[%c0_6, %c0_7] : memref<128x128xbf16, #tpu.memory_space<vmem>>, vector<128x128xbf16>
    %cst_8 = arith.constant dense<0.000000e+00> : vector<8x128xf32>
    %11 = tpu.matmul %9, %10, %cst_8 {dimension_numbers = #tpu.dot_dimension_numbers<[1], [0], [0], [1], [0, 0, 1, 1], [], []>} : vector<8x128xbf16>, vector<128x128xbf16>, vector<8x128xf32> -> vector<8x128xf32>
    %c0_9 = arith.constant 0 : index
    %c0_10 = arith.constant 0 : index
    %12 = vector.load %arg5[%c0_9, %c0_10] : memref<1x128xf32, #tpu.memory_space<vmem>>, vector<1x128xf32>
    %13 = vector.broadcast %12 : vector<1x128xf32> to vector<8x128xf32>
    %14 = arith.addf %11, %13 : vector<8x128xf32>
    %cst_11 = arith.constant 0.000000e+00 : f32
    %15 = vector.broadcast %cst_11 : f32 to vector<8x128xf32>
    %16 = arith.maximumf %14, %15 : vector<8x128xf32>
    %17 = arith.truncf %16 : vector<8x128xf32> to vector<8x128xbf16>
    %c0_12 = arith.constant 0 : index
    %c0_13 = arith.constant 0 : index
    %18 = vector.load %arg6[%c0_12, %c0_13] : memref<128x128xbf16, #tpu.memory_space<vmem>>, vector<128x128xbf16>
    %cst_14 = arith.constant dense<0.000000e+00> : vector<8x128xf32>
    %19 = tpu.matmul %17, %18, %cst_14 {dimension_numbers = #tpu.dot_dimension_numbers<[1], [0], [0], [1], [0, 0, 1, 1], [], []>} : vector<8x128xbf16>, vector<128x128xbf16>, vector<8x128xf32> -> vector<8x128xf32>
    %c0_15 = arith.constant 0 : index
    %c0_16 = arith.constant 0 : index
    %20 = vector.load %arg7[%c0_15, %c0_16] : memref<1x128xf32, #tpu.memory_space<vmem>>, vector<1x128xf32>
    %21 = vector.broadcast %20 : vector<1x128xf32> to vector<8x128xf32>
    %22 = arith.addf %19, %21 : vector<8x128xf32>
    %23 = arith.truncf %22 : vector<8x128xf32> to vector<8x128xbf16>
    %c0_17 = arith.constant 0 : index
    %c0_18 = arith.constant 0 : index
    %24 = vector.load %arg8[%c0_17, %c0_18] : memref<8x128xbf16, #tpu.memory_space<vmem>>, vector<8x128xbf16>
    tpu.vector_store %arg8[%c0_17, %c0_18], %23 {strides = array<i32>} : memref<8x128xbf16, #tpu.memory_space<vmem>>, vector<8x128xbf16>,
    return
  }
  func.func @transform_0(%arg0: i32) -> (i32, i32) {
    %c0_i32 = arith.constant 0 : i32
    %c0_i32_0 = arith.constant 0 : i32
    return %arg0, %c0_i32 : i32, i32
  }
  func.func @transform_1(%arg0: i32) -> (i32, i32) {
    %c0_i32 = arith.constant 0 : i32
    %c0_i32_0 = arith.constant 0 : i32
    %c0_i32_1 = arith.constant 0 : i32
    return %c0_i32, %c0_i32_0 : i32, i32
  }
  func.func @transform_2(%arg0: i32) -> (i32, i32) {
    %c0_i32 = arith.constant 0 : i32
    %c0_i32_0 = arith.constant 0 : i32
    %c0_i32_1 = arith.constant 0 : i32
    return %c0_i32, %c0_i32_0 : i32, i32
  }
  func.func @transform_3(%arg0: i32) -> (i32, i32) {
    %c0_i32 = arith.constant 0 : i32
    %c0_i32_0 = arith.constant 0 : i32
    %c0_i32_1 = arith.constant 0 : i32
    return %c0_i32, %c0_i32_0 : i32, i32
  }
  func.func @transform_4(%arg0: i32) -> (i32, i32) {
    %c0_i32 = arith.constant 0 : i32
    %c0_i32_0 = arith.constant 0 : i32
    %c0_i32_1 = arith.constant 0 : i32
    return %c0_i32, %c0_i32_0 : i32, i32
  }
  func.func @transform_5(%arg0: i32) -> (i32, i32) {
    %c0_i32 = arith.constant 0 : i32
    %c0_i32_0 = arith.constant 0 : i32
    %c0_i32_1 = arith.constant 0 : i32
    return %c0_i32, %c0_i32_0 : i32, i32
  }
  func.func @transform_6(%arg0: i32) -> (i32, i32) {
    %c0_i32 = arith.constant 0 : i32
    %c0_i32_0 = arith.constant 0 : i32
    %c0_i32_1 = arith.constant 0 : i32
    return %c0_i32, %c0_i32_0 : i32, i32
  }
  func.func @transform_7(%arg0: i32) -> (i32, i32) {
    %c0_i32 = arith.constant 0 : i32
    %c0_i32_0 = arith.constant 0 : i32
    return %arg0, %c0_i32 : i32, i32
  }
}

</mosaic_0001>

<bundles_post_ra>
// kernel: fcdqn_sokoban_forward.1
= control target key start
LH: loop header
LB: loop body
LE: loop exit
PB: predicated region body
PF: predicated region fallthrough
CT: control target
= control target key end

     0   :  { %12 = vsyncpa [#allocation3], 0  ;;  %s705_s0 = inlined_call_operand.vmem [shape: f32[8,256], index: 0, kind: input, shape index: {}]   ;;  %s706_s1 = inlined_call_operand.hbm [shape: bf16[256,128], index: 1, kind: input, shape index: {}]   ;;  %s707_s2 = inlined_call_operand.vmem [shape: f32[1,128], index: 2, kind: input, shape index: {}]   ;;  %s708_s3 = inlined_call_operand.vmem [shape: bf16[128,128], index: 3, kind: input, shape index: {}]   ;;  %s709_s4 = inlined_call_operand.vmem [shape: f32[1,128], index: 4, kind: input, shape index: {}]   ;;  %s710_s5 = inlined_call_operand.hbm [shape: bf16[128,128], index: 5, kind: input, shape index: {}]   ;;  %s711_s6 = inlined_call_operand.vmem [shape: f32[1,128], index: 6, kind: input, shape index: {}]   ;;  %s712_s7 = inlined_call_operand.vmem [shape: bf16[8,128], index: 7, kind: output, shape index: {}]  }
   0x1   :  { %s20_s26 = sshll.u32 %s706_s1, 4  ;;  %s21_s26 = int_to_ptr.hbm [resolvable:$true] %s20_s26 }
   0x2   :  { %13 = vsyncpa [#allocation5], 0  ;;  %s613_s27 = smov [#allocation2]   ;;  %s39_s8 = sshll.u32 %s710_s5, 4  ;;  %s40_s8 = int_to_ptr.hbm [resolvable:$true] %s39_s8 }
   0x3   :  { %s22_s28 = sshll.u32 %s613_s27, 4  ;;  %s614_s9 = smov 64   ;;  %s23_s28 = int_to_ptr.vmem [resolvable:$true] %s22_s28 }
   0x4   :  { %s615_s10 = smov 4   ;;  %s616_s11 = smov [#allocation4]  }
   0x5   :  { %28 = dma.hbm_to_vmem [thread:$0]  %s21_s26, 2048, %s23_s28, [#allocation3], %s614_s9, %s614_s9, %s615_s10  }
   0x6   :  { %s41_s12 = sshll.u32 %s616_s11, 4  ;;  %s42_s12 = int_to_ptr.vmem [resolvable:$true] %s41_s12 }
   0x7   :  { %47 = dma.hbm_to_vmem [thread:$0]  %s40_s8, 1024, %s42_s12, [#allocation5], %s614_s9, %s614_s9, %s615_s10  }
   0x8   :  { %609 = dma.done.wait [#allocation3], 2048  }
   0x9   :  { %610 = vsyncadd [#allocation3], 4294965248 }
   0xa   :  { %611 = dma.done.wait [#allocation5], 1024  }
   0xb   :  { %612 = vsyncadd [#allocation5], 4294966272  ;;  %v529_v0 = vld [vmem:[#allocation2 + $0x38] sm:$0xff]  ;;  %v528_v2 = vld [vmem:[#allocation2 + $0x30] sm:$0xff] }
   0xc   :  { %v537_v1 = vld [vmem:[#allocation2 + $0x78] sm:$0xff]  ;;  %194 = vmatpush.bf16.msra.mxu0 %v529_v0  ;;  %v536_v3 = vld [vmem:[#allocation2 + $0x70] sm:$0xff]  ;;  %v527_v4 = vld [vmem:[#allocation2 + $0x28] sm:$0xff] }
   0xd   :  { %207 = vmatpush.bf16.msra.mxu1 %v537_v1  ;;  %v535_v5 = vld [vmem:[#allocation2 + $0x68] sm:$0xff]  ;;  %v545_v6 = vld [vmem:[%s708_s3 + $0x38] sm:$0xff]  ;;  %v544_v7 = vld [vmem:[%s708_s3 + $0x30] sm:$0xff] }
   0xe   :  { %290 = vmatpush.bf16.msra.mxu2 %v545_v6  ;;  %v526_v8 = vld [vmem:[#allocation2 + $0x20] sm:$0xff]  ;;  %v543_v10 = vld [vmem:[%s708_s3 + $0x28] sm:$0xff]  ;;  %v525_v11 = vld [vmem:[#allocation2 + $0x18] sm:$0xff] }
   0xf   :  { %v534_v9 = vld [vmem:[#allocation2 + $0x60] sm:$0xff]  ;;  %v533_v12 = vld [vmem:[#allocation2 + $0x58] sm:$0xff]  ;;  %v524_v14 = vld [vmem:[#allocation2 + $0x10] sm:$0xff] }
  0x10   :  { %195 = vmatpush.bf16.msra.mxu0 %v528_v2  ;;  %v542_v13 = vld [vmem:[%s708_s3 + $0x20] sm:$0xff]  ;;  %v532_v15 = vld [vmem:[#allocation2 + $0x50] sm:$0xff]  ;;  %v541_v16 = vld [vmem:[%s708_s3 + $0x18] sm:$0xff] }
  0x11   :  { %208 = vmatpush.bf16.msra.mxu1 %v536_v3  ;;  %v523_v17 = vld [vmem:[#allocation2 + $0x8] sm:$0xff]  ;;  %v540_v19 = vld [vmem:[%s708_s3 + $0x10] sm:$0xff]  ;;  %v522_v20 = vld [vmem:[#allocation2] sm:$0xff] }
  0x12   :  { %291 = vmatpush.bf16.msra.mxu2 %v544_v7  ;;  %v531_v18 = vld [vmem:[#allocation2 + $0x48] sm:$0xff]  ;;  %v530_v21 = vld [vmem:[#allocation2 + $0x40] sm:$0xff]  ;;  %v553_v28 = vld [vmem:[#allocation4 + $0x38] sm:$0xff] }
  0x13   :  { %v58_v22 = vld [vmem:[%s705_s0] sm:$0xff]  ;;  %v59_v23 = vld [vmem:[%s705_s0 + $0x8] sm:$0xff]  ;;  %373 = vmatpush.bf16.msra.mxu3 %v553_v28  ;;  %v552_v29 = vld [vmem:[#allocation4 + $0x30] sm:$0xff] }
  0x14   :  { %196 = vmatpush.bf16.msra.mxu0 %v527_v4  ;;  %v60_v24 = vpack.c.bf16 %v58_v22, %v58_v22  ;;  %v61_v25 = vpack.c.bf16 %v59_v23, %v59_v23  ;;  %v539_v26 = vld [vmem:[%s708_s3 + $0x8] sm:$0xff]  ;;  %v538_v27 = vld [vmem:[%s708_s3] sm:$0xff]  ;;  %v549_v32 = vld [vmem:[#allocation4 + $0x18] sm:$0xff] }
  0x15   :  { %209 = vmatpush.bf16.msra.mxu1 %v535_v5  ;;  %v551_v30 = vld [vmem:[#allocation4 + $0x28] sm:$0xff]  ;;  %v550_v31 = vld [vmem:[#allocation4 + $0x20] sm:$0xff]  ;;  %v548_v33 = vld [vmem:[#allocation4 + $0x10] sm:$0xff] }
  0x16   :  { %292 = vmatpush.bf16.msra.mxu2 %v543_v10  ;;  %v558_v34 = vld [vmem:[%s707_s2] ss:$0 sm:$0xff]  ;;  %v547_v43 = vld [vmem:[#allocation4 + $0x8] sm:$0xff] }
  0x17   :  { %374 = vmatpush.bf16.msra.mxu3 %v552_v29  ;;  %v546_v44 = vld [vmem:[#allocation4] sm:$0xff] }
  0x18   :  { %197 = vmatpush.bf16.msra.mxu0 %v526_v8  ;;  %v559_v45 = vld [vmem:[%s709_s4] ss:$0 sm:$0xff] }
  0x19   :  { %210 = vmatpush.bf16.msra.mxu1 %v534_v9  ;;  %v560_v51 = vld [vmem:[%s711_s6] ss:$0 sm:$0xff] }
  0x1a   :  { %293 = vmatpush.bf16.msra.mxu2 %v542_v13 }
  0x1b   :  { %375 = vmatpush.bf16.msra.mxu3 %v551_v30 }
  0x1c   :  { %198 = vmatpush.bf16.msra.mxu0 %v525_v11 }
  0x1d   :  { %211 = vmatpush.bf16.msra.mxu1 %v533_v12 }
  0x1e   :  { %294 = vmatpush.bf16.msra.mxu2 %v541_v16 }
  0x1f   :  { %376 = vmatpush.bf16.msra.mxu3 %v550_v31 }
  0x20   :  { %199 = vmatpush.bf16.msra.mxu0 %v524_v14 }
  0x21   :  { %212 = vmatpush.bf16.msra.mxu1 %v532_v15 }
  0x22   :  { %295 = vmatpush.bf16.msra.mxu2 %v540_v19 }
  0x23   :  { %377 = vmatpush.bf16.msra.mxu3 %v549_v32 }
  0x24   :  { %200 = vmatpush.bf16.msra.mxu0 %v523_v17 }
  0x25   :  { %213 = vmatpush.bf16.msra.mxu1 %v531_v18 }
  0x26   :  { %296 = vmatpush.bf16.msra.mxu2 %v539_v26 }
  0x27   :  { %378 = vmatpush.bf16.msra.mxu3 %v548_v33 }
  0x28   :  { %201 = vmatpush.bf16.msra.mxu0 %v522_v20 }
  0x29   :  { %214 = vmatpush.bf16.msra.mxu1 %v530_v21 }
  0x2a   :  { %297 = vmatpush.bf16.msra.mxu2 %v538_v27 }
  0x2b   :  { %202 = vmatmul.bf16.vlgmr.msra.gmra.mxu0 %v60_v24  ;;  %379 = vmatpush.bf16.msra.mxu3 %v547_v43 }
  0x2c   :  { %215 = vmatmul.bf16.vlgmr.msra.gmra.mxu1 %v61_v25 }
  0x2f   :  { %380 = vmatpush.bf16.msra.mxu3 %v546_v44 }
  0xa8   :  { %v203_v35 = vpop.f32.mrf.mxu0 }
  0xa9   :  { %v216_v36 = vpop.f32.mrf.mxu1  ;;  %v204_v37 = vadd.f32 %v558_v34, %v203_v35 }
  0xab   :  { %v217_v38 = vadd.f32 %v216_v36, %v204_v37 }
  0xad   :  { %v220_v39 = vmax.f32 %v217_v38, 0.0 }
  0xaf   :  { %v221_v40 = vpack.c.bf16 %v220_v39, %v220_v39 }
  0xb0   :  { %v205_v41 = vpop.f32.mrf.mxu0 }
  0xb1   :  { %v218_v42 = vpop.f32.mrf.mxu1  ;;  %298 = vmatmul.bf16.vlgmr.msra.gmra.mxu2 %v221_v40 }
 0x134   :  { %v299_v46 = vpop.f32.mrf.mxu2 }
 0x135   :  { %v300_v47 = vadd.f32 %v559_v45, %v299_v46 }
 0x137   :  { %v303_v48 = vmax.f32 %v300_v47, 0.0 }
 0x139   :  { %v304_v49 = vpack.c.bf16 %v303_v48, %v303_v48 }
 0x13b   :  { %381 = vmatmul.bf16.vlgmr.msra.gmra.mxu3 %v304_v49 }
 0x13c   :  { %v301_v50 = vpop.f32.mrf.mxu2 }
 0x1be   :  { %v382_v52 = vpop.f32.mrf.mxu3 }
 0x1bf   :  { %v383_v53 = vadd.f32 %v560_v51, %v382_v52 }
 0x1c1   :  { %v386_v54 = vpack.c.bf16 %v383_v53, %v383_v53 }
 0x1c3   :  { %387 = vst [vmem:[%s712_s7] sm:$0xf] %v386_v54 }
 0x1c6   :  { %v384_v55 = vpop.f32.mrf.mxu3 }
 0x1c7   :  { %392 = vsyncpa [#allocation3], 1 }
 0x1c8   :  { %393 = vsyncpa [#allocation5], 1 }

</bundles_post_ra>
